<compile_context>
chip_gen: v7x
topology: tpu7x:2x2x1
jax: 0.10.0
libtpu: 0.0.40
codegen_flags: <defaults>
</compile_context>

<pallas_src>
import jax
import jax.numpy as jnp
from jax.experimental import pallas as pl
from jax.experimental.pallas import tpu as pltpu


def _make_kernel(input_dim, hidden, num_graphs, n_nodes, pool_ratio, out_pad):
    """Build the fused kernel with all shape/config values closed over statically."""
    OFF_W1 = 0
    OFF_W2 = input_dim
    OFF_S = input_dim + hidden          # start of the packed (1,hidden) parameter rows
    NEG_BIG = -1e30
    NEG_SLOPE = 0.2
    EPS = 1e-5
    N = n_nodes
    H = hidden
    G = num_graphs

    def _t(a, b, dims):
        return jax.lax.dot_general(a, b, (dims, ((), ())),
                                   preferred_element_type=jnp.float32)

    def kernel(p_ref, x_ref, adj_gat_ref, adj_gc_ref, bt_ref, out_ref):
        # ---- unpack the single parameter slab (static slices: free) ----
        def prow(r):
            return p_ref[OFF_S + r:OFF_S + r + 1, :]        # (1, H)

        w1 = p_ref[OFF_W1:OFF_W1 + input_dim, :]            # (F_in, H)
        w2 = p_ref[OFF_W2:OFF_W2 + hidden, :]                # (H, H)
        asrc1, adst1, b1 = prow(0), prow(1), prow(2)
        g1, be1 = prow(3), prow(4)
        asrc2, adst2, b2 = prow(5), prow(6), prow(7)
        g2, be2 = prow(8), prow(9)
        wrel, wroot = prow(10), prow(11)
        bgc = p_ref[OFF_S + 12:OFF_S + 13, 0:1]              # (1, 1)

        x = x_ref[...]                                       # (N, F_in)
        adj_gat = adj_gat_ref[...]                           # (N, N) incl. self loops
        adj_gc = adj_gc_ref[...]                             # (N, N) no self loops
        bt = bt_ref[...]                                     # (N, G) graph membership

        # in-kernel index / mask / identity generation (no DMAs for these)
        ii = jax.lax.broadcasted_iota(jnp.int32, (N, N), 0)  # row index i
        jj = jax.lax.broadcasted_iota(jnp.int32, (N, N), 1)  # col index j
        eye = jnp.where(ii == jj, 1.0, 0.0).astype(jnp.float32)

        def rowdot_vec(a, v):                                # VPU: (N,H)*(1,H) -> (N,1)
            return jnp.sum(a * v, axis=1, keepdims=True)

        def gat(h_in, w, asrc, adst, bias):
            h = jnp.dot(h_in, w, preferred_element_type=jnp.float32)     # (N, H)
            a_dst = rowdot_vec(h, adst)                                  # (N, 1)  VPU
            a_src = _t(asrc, h, ((1,), (1,)))                            # (1, N)
            e = a_dst + a_src                                            # e[i,j]=a_dst_i+a_src_j
            e = jnp.where(e > 0, e, NEG_SLOPE * e)                       # LeakyReLU(0.2)
            e = jnp.where(adj_gat > 0, e, NEG_BIG)                       # mask non-edges
            e = e - jnp.max(e, axis=1, keepdims=True)
            p = jnp.exp(e) * adj_gat
            alpha = p / jnp.sum(p, axis=1, keepdims=True)                # softmax over sources
            return jnp.dot(alpha, h, preferred_element_type=jnp.float32) + bias

        def bnorm(v, gamma, beta):                                       # torch BN, training
            mean = jnp.mean(v, axis=0, keepdims=True)
            var = jnp.mean((v - mean) ** 2, axis=0, keepdims=True)       # biased variance
            return (v - mean) * jax.lax.rsqrt(var + EPS) * gamma + beta

        x1 = gat(x, w1, asrc1, adst1, b1)
        x1 = jnp.maximum(bnorm(x1, g1, be1), 0.0)
        x2 = gat(x1, w2, asrc2, adst2, b2)
        x2 = jnp.maximum(bnorm(x2, g2, be2) + x1, 0.0)

        # ----- SAGPooling: GraphConv score + per-graph top-k + tanh gate -----
        agg = jnp.dot(adj_gc, x2, preferred_element_type=jnp.float32)    # (N, H) neighbor sums
        score_c = rowdot_vec(agg, wrel) + rowdot_vec(x2, wroot) + bgc    # (N, 1)
        # exact transpose of the SAME values (identity matmul) -> consistent tie-break
        score_r = _t(score_c, eye, ((0,), (0,)))                         # (1, N)

        sg = _t(bt, bt, ((1,), (1,)))                                    # (N, N) same-graph mask
        n_per = jnp.sum(bt, axis=0, keepdims=True)                       # (1, G)
        krow = jnp.ceil(pool_ratio * n_per)                              # (1, G) k = ceil(r*n_g)
        kvec = jnp.sum(bt * krow, axis=1, keepdims=True)                 # (N, 1) k of node's graph

        # beats[i,j] = 1 if node j outranks node i within the same graph (ties -> lower index)
        beats = sg * jnp.where(
            (score_r > score_c) | ((score_r == score_c) & (jj < ii)), 1.0, 0.0)
        rank = jnp.sum(beats, axis=1, keepdims=True)                     # (N, 1)
        sel = jnp.where(rank < kvec, 1.0, 0.0)                           # (N, 1) top-k mask

        xp = x2 * jnp.tanh(score_c)                                      # gated features
        memberT = bt * sel                                               # (N, G) pooled membership

        gsum = _t(memberT, xp, ((0,), (0,)))                             # (G, H) = memberT^T @ xp
        gcnt = _t(memberT, jnp.ones((N, 1), jnp.float32), ((0,), (0,)))  # (G, 1) selected counts
        gmean = gsum / jnp.maximum(gcnt, 1.0)                            # global mean pool

        gmax_rows = []
        for g in range(G):                                               # tiny static loop, no stores
            m = memberT[:, g:g + 1]                                      # (N, 1)
            gmax_rows.append(
                jnp.max(jnp.where(m > 0, xp, NEG_BIG), axis=0, keepdims=True))
        gmax = jnp.concatenate(gmax_rows, axis=0)                        # (G, H) global max pool

        embed = jnp.concatenate([gmax, gmean], axis=1)                   # (G, 2H)
        pad = out_pad - 2 * H
        if pad > 0:                                                      # lane-dense output slab
            embed = jnp.concatenate(
                [embed, jnp.zeros((G, pad), jnp.float32)], axis=1)
        out_ref[...] = embed                                             # one full-tile store

    return kernel


def _pack_params(params, input_dim, hidden):
    """Pack every parameter into one (R, hidden) slab (rows padded to a multiple of 8)."""
    rows = [
        params["w1"],                                        # rows [0, F_in)
        params["w2"],                                        # rows [F_in, F_in+H)
        params["asrc1"], params["adst1"], params["b1"],
        params["bn1_g"], params["bn1_b"],
        params["asrc2"], params["adst2"], params["b2"],
        params["bn2_g"], params["bn2_b"],
        params["wrel"], params["wroot"],
        jnp.broadcast_to(params["bgc"], (1, hidden)),        # bgc broadcast across lanes
    ]
    P = jnp.concatenate([r.astype(jnp.float32) for r in rows], axis=0)
    pad = (-P.shape[0]) % 8
    if pad:
        P = jnp.concatenate([P, jnp.zeros((pad, hidden), jnp.float32)], axis=0)
    return P


def _build_dense(x, edge_index, batch, num_graphs):
    """Dense graph operators for one graph-batch."""
    n = x.shape[0]
    src, dst = edge_index[0], edge_index[1]
    adj = jnp.zeros((n, n), jnp.float32).at[dst, src].set(1.0)          # adj[target, source]
    adj_gat = jnp.maximum(adj, jnp.eye(n, dtype=jnp.float32))           # GATConv self loops
    bt = (batch[:, None] == jnp.arange(num_graphs)[None, :]).astype(jnp.float32)
    return x.astype(jnp.float32), adj_gat, adj, bt


def _pallas_forward_stacked(P, x_b, adj_gat_b, adj_gc_b, bt_b, *,
                            input_dim, hidden, num_graphs, pool_ratio):
    """Run B independent graph-batches, one per grid step (megacore-parallel)."""
    B, N, _ = x_b.shape
    out_pad = ((2 * hidden + 127) // 128) * 128
    kernel = _make_kernel(input_dim, hidden, num_graphs, N, pool_ratio, out_pad)

    out = pl.pallas_call(
        kernel,
        grid=(B,),
        in_specs=[
            pl.BlockSpec(P.shape, lambda b: (0, 0)),                     # shared slab, 1 DMA
            pl.BlockSpec((None, N, input_dim), lambda b: (b, 0, 0)),
            pl.BlockSpec((None, N, N), lambda b: (b, 0, 0)),
            pl.BlockSpec((None, N, N), lambda b: (b, 0, 0)),
            pl.BlockSpec((None, N, num_graphs), lambda b: (b, 0, 0)),
        ],
        out_specs=pl.BlockSpec((None, num_graphs, out_pad), lambda b: (b, 0, 0)),
        out_shape=jax.ShapeDtypeStruct((B, num_graphs, out_pad), jnp.float32),
        compiler_params=pltpu.CompilerParams(
            dimension_semantics=("parallel",)),
    )(P, x_b, adj_gat_b, adj_gc_b, bt_b)
    return out[:, :, :2 * hidden]                                        # drop lane padding


def contrastive_gnn_forward(x, edge_index, batch, params, num_graphs, pool_ratio=0.5):
    """Module-equivalent forward for one graph-batch: returns x_embed (num_graphs, 2*hidden).
    NOTE: the PyTorch forward also computes self.fc(x_embed) but discards it, so the
    fc path is dead code and is intentionally not executed here."""
    input_dim = x.shape[1]
    hidden = params["w1"].shape[1]
    x32, adj_gat, adj, bt = _build_dense(x, edge_index, batch, num_graphs)
    P = _pack_params(params, input_dim, hidden)
    out = _pallas_forward_stacked(
        P, x32[None], adj_gat[None], adj[None], bt[None],
        input_dim=input_dim, hidden=hidden, num_graphs=num_graphs, pool_ratio=pool_ratio)
    return out[0]


def contrastive_gnn_forward_batched(xs, edge_index, batch, params, num_graphs, pool_ratio=0.5):
    """B independent graph-batches sharing one topology; xs: (B, N, F_in)."""
    input_dim = xs.shape[2]
    hidden = params["w1"].shape[1]
    _, adj_gat, adj, bt = _build_dense(xs[0], edge_index, batch, num_graphs)
    B = xs.shape[0]
    P = _pack_params(params, input_dim, hidden)
    return _pallas_forward_stacked(
        P, xs.astype(jnp.float32),
        jnp.broadcast_to(adj_gat, (B,) + adj_gat.shape),
        jnp.broadcast_to(adj, (B,) + adj.shape),
        jnp.broadcast_to(bt, (B,) + bt.shape),
        input_dim=input_dim, hidden=hidden, num_graphs=num_graphs, pool_ratio=pool_ratio)


if __name__ == "__main__":
    input_dim, hidden_dim, embedding_dim = 8, 32, 16
    n_nodes, num_graphs = 16, 2

    key = jax.random.PRNGKey(0)
    ks = jax.random.split(key, 12)
    s = 0.2
    params = {
        "w1": s * jax.random.normal(ks[0], (input_dim, hidden_dim), jnp.float32),
        "asrc1": s * jax.random.normal(ks[1], (1, hidden_dim), jnp.float32),
        "adst1": s * jax.random.normal(ks[2], (1, hidden_dim), jnp.float32),
        "b1": jnp.zeros((1, hidden_dim), jnp.float32),
        "bn1_g": jnp.ones((1, hidden_dim), jnp.float32),
        "bn1_b": jnp.zeros((1, hidden_dim), jnp.float32),
        "w2": s * jax.random.normal(ks[3], (hidden_dim, hidden_dim), jnp.float32),
        "asrc2": s * jax.random.normal(ks[4], (1, hidden_dim), jnp.float32),
        "adst2": s * jax.random.normal(ks[5], (1, hidden_dim), jnp.float32),
        "b2": jnp.zeros((1, hidden_dim), jnp.float32),
        "bn2_g": jnp.ones((1, hidden_dim), jnp.float32),
        "bn2_b": jnp.zeros((1, hidden_dim), jnp.float32),
        "wrel": s * jax.random.normal(ks[6], (1, hidden_dim), jnp.float32),
        "wroot": s * jax.random.normal(ks[7], (1, hidden_dim), jnp.float32),
        "bgc": jnp.zeros((1, 1), jnp.float32),
        # fc weights (self.fc) are unused by the forward's return value -> not needed.
    }

    x = jax.random.normal(ks[9], (n_nodes, input_dim), jnp.float32)

    # Two 8-node ring graphs, bidirected edges.
    edges = []
    for g in range(num_graphs):
        base = g * 8
        for i in range(8):
            u, v = base + i, base + (i + 1) % 8
            edges.append((u, v))
            edges.append((v, u))
    edge_index = jnp.array(edges, dtype=jnp.int32).T          # (2, 32): [src; dst]
    batch = jnp.array([0] * 8 + [1] * 8, dtype=jnp.int32)     # (16,)

    # Module-equivalent single graph-batch forward.
    x_embed = contrastive_gnn_forward(x, edge_index, batch, params,
                                      num_graphs=num_graphs, pool_ratio=0.5)
    jax.block_until_ready(x_embed)
    assert x_embed.shape == (num_graphs, 2 * hidden_dim)
    assert bool(jnp.all(jnp.isfinite(x_embed)))

    # Batched path: 2 independent graph-batches per pallas_call (parallel grid axis).
    x_other = jax.random.normal(ks[10], (n_nodes, input_dim), jnp.float32)
    xs = jnp.stack([x, x_other], axis=0)                      # (2, 16, 8)
    x_embed_b = contrastive_gnn_forward_batched(xs, edge_index, batch, params,
                                                num_graphs=num_graphs, pool_ratio=0.5)
    jax.block_until_ready(x_embed_b)
    assert x_embed_b.shape == (2, num_graphs, 2 * hidden_dim)
    assert bool(jnp.all(jnp.isfinite(x_embed_b)))
    assert bool(jnp.allclose(x_embed_b[0], x_embed, atol=1e-5, rtol=1e-5))

    print("KERNEL_OK")
</pallas_src>

<mosaic_0001>
module attributes {stable_mosaic.version = 11 : i64} {
  func.func @kernel(%arg0: i32, %arg1: memref<56x32xf32, #tpu.memory_space<vmem>>, %arg2: memref<1x16x8xf32, #tpu.memory_space<vmem>>, %arg3: memref<1x16x16xf32, #tpu.memory_space<vmem>>, %arg4: memref<1x16x16xf32, #tpu.memory_space<vmem>>, %arg5: memref<1x16x2xf32, #tpu.memory_space<vmem>>, %arg6: memref<1x2x128xf32, #tpu.memory_space<vmem>>) attributes {dimension_semantics = [#tpu.dimension_semantics<parallel>], iteration_bounds = array<i64: 1>, scalar_prefetch = 0 : i64, scratch_operands = 0 : i64, tpu.core_type = #tpu.core_type<tc>, window_params = [{pipeline_mode = #tpu.pipeline_mode<synchronous>, transform_indices = @transform_0, window_bounds = array<i64: 56, 32>}, {transform_indices = @transform_1, window_bounds = array<i64: 1, 16, 8>}, {transform_indices = @transform_2, window_bounds = array<i64: 1, 16, 16>}, {transform_indices = @transform_3, window_bounds = array<i64: 1, 16, 16>}, {transform_indices = @transform_4, window_bounds = array<i64: 1, 16, 2>}, {transform_indices = @transform_5, window_bounds = array<i64: 1, 2, 128>}]} {
    %c0 = arith.constant 0 : index
    %c0_0 = arith.constant 0 : index
    %0 = vector.load %arg1[%c0, %c0_0] : memref<56x32xf32, #tpu.memory_space<vmem>>, vector<8x32xf32>
    %c8 = arith.constant 8 : index
    %c0_1 = arith.constant 0 : index
    %1 = vector.load %arg1[%c8, %c0_1] : memref<56x32xf32, #tpu.memory_space<vmem>>, vector<32x32xf32>
    %c40 = arith.constant 40 : index
    %c0_2 = arith.constant 0 : index
    %2 = vector.load %arg1[%c40, %c0_2] : memref<56x32xf32, #tpu.memory_space<vmem>>, vector<1x32xf32>
    %c41 = arith.constant 41 : index
    %c0_3 = arith.constant 0 : index
    %3 = vector.load %arg1[%c41, %c0_3] : memref<56x32xf32, #tpu.memory_space<vmem>>, vector<1x32xf32>
    %c42 = arith.constant 42 : index
    %c0_4 = arith.constant 0 : index
    %4 = vector.load %arg1[%c42, %c0_4] : memref<56x32xf32, #tpu.memory_space<vmem>>, vector<1x32xf32>
    %c43 = arith.constant 43 : index
    %c0_5 = arith.constant 0 : index
    %5 = vector.load %arg1[%c43, %c0_5] : memref<56x32xf32, #tpu.memory_space<vmem>>, vector<1x32xf32>
    %c44 = arith.constant 44 : index
    %c0_6 = arith.constant 0 : index
    %6 = vector.load %arg1[%c44, %c0_6] : memref<56x32xf32, #tpu.memory_space<vmem>>, vector<1x32xf32>
    %c45 = arith.constant 45 : index
    %c0_7 = arith.constant 0 : index
    %7 = vector.load %arg1[%c45, %c0_7] : memref<56x32xf32, #tpu.memory_space<vmem>>, vector<1x32xf32>
    %c46 = arith.constant 46 : index
    %c0_8 = arith.constant 0 : index
    %8 = vector.load %arg1[%c46, %c0_8] : memref<56x32xf32, #tpu.memory_space<vmem>>, vector<1x32xf32>
    %c47 = arith.constant 47 : index
    %c0_9 = arith.constant 0 : index
    %9 = vector.load %arg1[%c47, %c0_9] : memref<56x32xf32, #tpu.memory_space<vmem>>, vector<1x32xf32>
    %c48 = arith.constant 48 : index
    %c0_10 = arith.constant 0 : index
    %10 = vector.load %arg1[%c48, %c0_10] : memref<56x32xf32, #tpu.memory_space<vmem>>, vector<1x32xf32>
    %c49 = arith.constant 49 : index
    %c0_11 = arith.constant 0 : index
    %11 = vector.load %arg1[%c49, %c0_11] : memref<56x32xf32, #tpu.memory_space<vmem>>, vector<1x32xf32>
    %c50 = arith.constant 50 : index
    %c0_12 = arith.constant 0 : index
    %12 = vector.load %arg1[%c50, %c0_12] : memref<56x32xf32, #tpu.memory_space<vmem>>, vector<1x32xf32>
    %c51 = arith.constant 51 : index
    %c0_13 = arith.constant 0 : index
    %13 = vector.load %arg1[%c51, %c0_13] : memref<56x32xf32, #tpu.memory_space<vmem>>, vector<1x32xf32>
    %c52 = arith.constant 52 : index
    %c0_14 = arith.constant 0 : index
    %14 = vector.load %arg1[%c52, %c0_14] : memref<56x32xf32, #tpu.memory_space<vmem>>, vector<1x1xf32>
    %c0_15 = arith.constant 0 : index
    %c0_16 = arith.constant 0 : index
    %c0_17 = arith.constant 0 : index
    %15 = vector.load %arg2[%c0_15, %c0_16, %c0_17] : memref<1x16x8xf32, #tpu.memory_space<vmem>>, vector<1x16x8xf32>
    %16 = vector.shape_cast %15 : vector<1x16x8xf32> to vector<16x8xf32>
    %c0_18 = arith.constant 0 : index
    %c0_19 = arith.constant 0 : index
    %c0_20 = arith.constant 0 : index
    %17 = vector.load %arg3[%c0_18, %c0_19, %c0_20] : memref<1x16x16xf32, #tpu.memory_space<vmem>>, vector<1x16x16xf32>
    %18 = vector.shape_cast %17 : vector<1x16x16xf32> to vector<16x16xf32>
    %c0_21 = arith.constant 0 : index
    %c0_22 = arith.constant 0 : index
    %c0_23 = arith.constant 0 : index
    %19 = vector.load %arg4[%c0_21, %c0_22, %c0_23] : memref<1x16x16xf32, #tpu.memory_space<vmem>>, vector<1x16x16xf32>
    %20 = vector.shape_cast %19 : vector<1x16x16xf32> to vector<16x16xf32>
    %c0_24 = arith.constant 0 : index
    %c0_25 = arith.constant 0 : index
    %c0_26 = arith.constant 0 : index
    %21 = vector.load %arg5[%c0_24, %c0_25, %c0_26] : memref<1x16x2xf32, #tpu.memory_space<vmem>>, vector<1x16x2xf32>
    %22 = vector.shape_cast %21 : vector<1x16x2xf32> to vector<16x2xf32>
    %23 = tpu.iota {dimensions = array<i32: 0>} : vector<16x16xi32>
    %24 = tpu.iota {dimensions = array<i32: 1>} : vector<16x16xi32>
    %25 = arith.cmpi eq, %23, %24 : vector<16x16xi32>
    %cst = arith.constant 1.000000e+00 : f32
    %cst_27 = arith.constant 0.000000e+00 : f32
    %26 = vector.broadcast %cst : f32 to vector<16x16xf32>
    %27 = vector.broadcast %cst_27 : f32 to vector<16x16xf32>
    %28 = arith.select %25, %26, %27 : vector<16x16xi1>, vector<16x16xf32>
    %cst_28 = arith.constant dense<0.000000e+00> : vector<16x32xf32>
    %29 = tpu.matmul %16, %0, %cst_28 {dimension_numbers = #tpu.dot_dimension_numbers<[1], [0], [0], [1], [0, 0, 1, 1], [], []>} : vector<16x8xf32>, vector<8x32xf32>, vector<16x32xf32> -> vector<16x32xf32>
    %30 = vector.broadcast %3 : vector<1x32xf32> to vector<16x32xf32>
    %31 = arith.mulf %29, %30 : vector<16x32xf32>
    %cst_29 = arith.constant dense<0.000000e+00> : vector<16xf32>
    %32 = vector.multi_reduction <add>, %31, %cst_29 [1] : vector<16x32xf32> to vector<16xf32>
    %33 = vector.shape_cast %32 : vector<16xf32> to vector<16x1xf32>
    %cst_30 = arith.constant dense<0.000000e+00> : vector<1x16xf32>
    %34 = tpu.matmul %2, %29, %cst_30 {dimension_numbers = #tpu.dot_dimension_numbers<[1], [1], [0], [0], [0, 0, 1, 0], [], []>} : vector<1x32xf32>, vector<16x32xf32>, vector<1x16xf32> -> vector<1x16xf32>
    %35 = vector.broadcast %33 : vector<16x1xf32> to vector<16x16xf32>
    %36 = vector.broadcast %34 : vector<1x16xf32> to vector<16x16xf32>
    %37 = arith.addf %35, %36 : vector<16x16xf32>
    %cst_31 = arith.constant 0.000000e+00 : f32
    %38 = vector.broadcast %cst_31 : f32 to vector<16x16xf32>
    %39 = arith.cmpf ogt, %37, %38 : vector<16x16xf32>
    %cst_32 = arith.constant 2.000000e-01 : f32
    %40 = vector.broadcast %cst_32 : f32 to vector<16x16xf32>
    %41 = arith.mulf %40, %37 : vector<16x16xf32>
    %42 = arith.select %39, %37, %41 : vector<16x16xi1>, vector<16x16xf32>
    %cst_33 = arith.constant 0.000000e+00 : f32
    %43 = vector.broadcast %cst_33 : f32 to vector<16x16xf32>
    %44 = arith.cmpf ogt, %18, %43 : vector<16x16xf32>
    %cst_34 = arith.constant -1.000000e+30 : f32
    %45 = vector.broadcast %cst_34 : f32 to vector<16x16xf32>
    %46 = arith.select %44, %42, %45 : vector<16x16xi1>, vector<16x16xf32>
    %cst_35 = arith.constant dense<0xFF800000> : vector<16xf32>
    %47 = vector.multi_reduction <maximumf>, %46, %cst_35 [1] : vector<16x16xf32> to vector<16xf32>
    %48 = vector.shape_cast %47 : vector<16xf32> to vector<16x1xf32>
    %49 = vector.broadcast %48 : vector<16x1xf32> to vector<16x16xf32>
    %50 = arith.subf %46, %49 : vector<16x16xf32>
    %51 = math.exp %50 : vector<16x16xf32>
    %52 = arith.mulf %51, %18 : vector<16x16xf32>
    %cst_36 = arith.constant dense<0.000000e+00> : vector<16xf32>
    %53 = vector.multi_reduction <add>, %52, %cst_36 [1] : vector<16x16xf32> to vector<16xf32>
    %54 = vector.shape_cast %53 : vector<16xf32> to vector<16x1xf32>
    %55 = vector.broadcast %54 : vector<16x1xf32> to vector<16x16xf32>
    %56 = arith.divf %52, %55 : vector<16x16xf32>
    %cst_37 = arith.constant dense<0.000000e+00> : vector<16x32xf32>
    %57 = tpu.matmul %56, %29, %cst_37 {dimension_numbers = #tpu.dot_dimension_numbers<[1], [0], [0], [1], [0, 0, 1, 1], [], []>} : vector<16x16xf32>, vector<16x32xf32>, vector<16x32xf32> -> vector<16x32xf32>
    %58 = vector.broadcast %4 : vector<1x32xf32> to vector<16x32xf32>
    %59 = arith.addf %57, %58 : vector<16x32xf32>
    %cst_38 = arith.constant dense<0.000000e+00> : vector<32xf32>
    %60 = vector.multi_reduction <add>, %59, %cst_38 [0] : vector<16x32xf32> to vector<32xf32>
    %61 = vector.shape_cast %60 : vector<32xf32> to vector<1x32xf32>
    %cst_39 = arith.constant 1.600000e+01 : f32
    %62 = vector.broadcast %cst_39 : f32 to vector<1x32xf32>
    %63 = arith.divf %61, %62 : vector<1x32xf32>
    %64 = vector.broadcast %63 : vector<1x32xf32> to vector<16x32xf32>
    %65 = arith.subf %59, %64 : vector<16x32xf32>
    %66 = arith.mulf %65, %65 : vector<16x32xf32>
    %cst_40 = arith.constant dense<0.000000e+00> : vector<32xf32>
    %67 = vector.multi_reduction <add>, %66, %cst_40 [0] : vector<16x32xf32> to vector<32xf32>
    %68 = vector.shape_cast %67 : vector<32xf32> to vector<1x32xf32>
    %cst_41 = arith.constant 1.600000e+01 : f32
    %69 = vector.broadcast %cst_41 : f32 to vector<1x32xf32>
    %70 = arith.divf %68, %69 : vector<1x32xf32>
    %71 = vector.broadcast %63 : vector<1x32xf32> to vector<16x32xf32>
    %72 = arith.subf %59, %71 : vector<16x32xf32>
    %cst_42 = arith.constant 9.99999974E-6 : f32
    %73 = vector.broadcast %cst_42 : f32 to vector<1x32xf32>
    %74 = arith.addf %70, %73 : vector<1x32xf32>
    %75 = math.rsqrt %74 : vector<1x32xf32>
    %76 = vector.broadcast %75 : vector<1x32xf32> to vector<16x32xf32>
    %77 = arith.mulf %72, %76 : vector<16x32xf32>
    %78 = vector.broadcast %5 : vector<1x32xf32> to vector<16x32xf32>
    %79 = arith.mulf %77, %78 : vector<16x32xf32>
    %80 = vector.broadcast %6 : vector<1x32xf32> to vector<16x32xf32>
    %81 = arith.addf %79, %80 : vector<16x32xf32>
    %cst_43 = arith.constant 0.000000e+00 : f32
    %82 = vector.broadcast %cst_43 : f32 to vector<16x32xf32>
    %83 = arith.maximumf %81, %82 : vector<16x32xf32>
    %cst_44 = arith.constant dense<0.000000e+00> : vector<16x32xf32>
    %84 = tpu.matmul %83, %1, %cst_44 {dimension_numbers = #tpu.dot_dimension_numbers<[1], [0], [0], [1], [0, 0, 1, 1], [], []>} : vector<16x32xf32>, vector<32x32xf32>, vector<16x32xf32> -> vector<16x32xf32>
    %85 = vector.broadcast %8 : vector<1x32xf32> to vector<16x32xf32>
    %86 = arith.mulf %84, %85 : vector<16x32xf32>
    %cst_45 = arith.constant dense<0.000000e+00> : vector<16xf32>
    %87 = vector.multi_reduction <add>, %86, %cst_45 [1] : vector<16x32xf32> to vector<16xf32>
    %88 = vector.shape_cast %87 : vector<16xf32> to vector<16x1xf32>
    %cst_46 = arith.constant dense<0.000000e+00> : vector<1x16xf32>
    %89 = tpu.matmul %7, %84, %cst_46 {dimension_numbers = #tpu.dot_dimension_numbers<[1], [1], [0], [0], [0, 0, 1, 0], [], []>} : vector<1x32xf32>, vector<16x32xf32>, vector<1x16xf32> -> vector<1x16xf32>
    %90 = vector.broadcast %88 : vector<16x1xf32> to vector<16x16xf32>
    %91 = vector.broadcast %89 : vector<1x16xf32> to vector<16x16xf32>
    %92 = arith.addf %90, %91 : vector<16x16xf32>
    %cst_47 = arith.constant 0.000000e+00 : f32
    %93 = vector.broadcast %cst_47 : f32 to vector<16x16xf32>
    %94 = arith.cmpf ogt, %92, %93 : vector<16x16xf32>
    %cst_48 = arith.constant 2.000000e-01 : f32
    %95 = vector.broadcast %cst_48 : f32 to vector<16x16xf32>
    %96 = arith.mulf %95, %92 : vector<16x16xf32>
    %97 = arith.select %94, %92, %96 : vector<16x16xi1>, vector<16x16xf32>
    %cst_49 = arith.constant 0.000000e+00 : f32
    %98 = vector.broadcast %cst_49 : f32 to vector<16x16xf32>
    %99 = arith.cmpf ogt, %18, %98 : vector<16x16xf32>
    %cst_50 = arith.constant -1.000000e+30 : f32
    %100 = vector.broadcast %cst_50 : f32 to vector<16x16xf32>
    %101 = arith.select %99, %97, %100 : vector<16x16xi1>, vector<16x16xf32>
    %cst_51 = arith.constant dense<0xFF800000> : vector<16xf32>
    %102 = vector.multi_reduction <maximumf>, %101, %cst_51 [1] : vector<16x16xf32> to vector<16xf32>
    %103 = vector.shape_cast %102 : vector<16xf32> to vector<16x1xf32>
    %104 = vector.broadcast %103 : vector<16x1xf32> to vector<16x16xf32>
    %105 = arith.subf %101, %104 : vector<16x16xf32>
    %106 = math.exp %105 : vector<16x16xf32>
    %107 = arith.mulf %106, %18 : vector<16x16xf32>
    %cst_52 = arith.constant dense<0.000000e+00> : vector<16xf32>
    %108 = vector.multi_reduction <add>, %107, %cst_52 [1] : vector<16x16xf32> to vector<16xf32>
    %109 = vector.shape_cast %108 : vector<16xf32> to vector<16x1xf32>
    %110 = vector.broadcast %109 : vector<16x1xf32> to vector<16x16xf32>
    %111 = arith.divf %107, %110 : vector<16x16xf32>
    %cst_53 = arith.constant dense<0.000000e+00> : vector<16x32xf32>
    %112 = tpu.matmul %111, %84, %cst_53 {dimension_numbers = #tpu.dot_dimension_numbers<[1], [0], [0], [1], [0, 0, 1, 1], [], []>} : vector<16x16xf32>, vector<16x32xf32>, vector<16x32xf32> -> vector<16x32xf32>
    %113 = vector.broadcast %9 : vector<1x32xf32> to vector<16x32xf32>
    %114 = arith.addf %112, %113 : vector<16x32xf32>
    %cst_54 = arith.constant dense<0.000000e+00> : vector<32xf32>
    %115 = vector.multi_reduction <add>, %114, %cst_54 [0] : vector<16x32xf32> to vector<32xf32>
    %116 = vector.shape_cast %115 : vector<32xf32> to vector<1x32xf32>
    %cst_55 = arith.constant 1.600000e+01 : f32
    %117 = vector.broadcast %cst_55 : f32 to vector<1x32xf32>
    %118 = arith.divf %116, %117 : vector<1x32xf32>
    %119 = vector.broadcast %118 : vector<1x32xf32> to vector<16x32xf32>
    %120 = arith.subf %114, %119 : vector<16x32xf32>
    %121 = arith.mulf %120, %120 : vector<16x32xf32>
    %cst_56 = arith.constant dense<0.000000e+00> : vector<32xf32>
    %122 = vector.multi_reduction <add>, %121, %cst_56 [0] : vector<16x32xf32> to vector<32xf32>
    %123 = vector.shape_cast %122 : vector<32xf32> to vector<1x32xf32>
    %cst_57 = arith.constant 1.600000e+01 : f32
    %124 = vector.broadcast %cst_57 : f32 to vector<1x32xf32>
    %125 = arith.divf %123, %124 : vector<1x32xf32>
    %126 = vector.broadcast %118 : vector<1x32xf32> to vector<16x32xf32>
    %127 = arith.subf %114, %126 : vector<16x32xf32>
    %cst_58 = arith.constant 9.99999974E-6 : f32
    %128 = vector.broadcast %cst_58 : f32 to vector<1x32xf32>
    %129 = arith.addf %125, %128 : vector<1x32xf32>
    %130 = math.rsqrt %129 : vector<1x32xf32>
    %131 = vector.broadcast %130 : vector<1x32xf32> to vector<16x32xf32>
    %132 = arith.mulf %127, %131 : vector<16x32xf32>
    %133 = vector.broadcast %10 : vector<1x32xf32> to vector<16x32xf32>
    %134 = arith.mulf %132, %133 : vector<16x32xf32>
    %135 = vector.broadcast %11 : vector<1x32xf32> to vector<16x32xf32>
    %136 = arith.addf %134, %135 : vector<16x32xf32>
    %137 = arith.addf %136, %83 : vector<16x32xf32>
    %cst_59 = arith.constant 0.000000e+00 : f32
    %138 = vector.broadcast %cst_59 : f32 to vector<16x32xf32>
    %139 = arith.maximumf %137, %138 : vector<16x32xf32>
    %cst_60 = arith.constant dense<0.000000e+00> : vector<16x32xf32>
    %140 = tpu.matmul %20, %139, %cst_60 {dimension_numbers = #tpu.dot_dimension_numbers<[1], [0], [0], [1], [0, 0, 1, 1], [], []>} : vector<16x16xf32>, vector<16x32xf32>, vector<16x32xf32> -> vector<16x32xf32>
    %141 = vector.broadcast %12 : vector<1x32xf32> to vector<16x32xf32>
    %142 = arith.mulf %140, %141 : vector<16x32xf32>
    %cst_61 = arith.constant dense<0.000000e+00> : vector<16xf32>
    %143 = vector.multi_reduction <add>, %142, %cst_61 [1] : vector<16x32xf32> to vector<16xf32>
    %144 = vector.shape_cast %143 : vector<16xf32> to vector<16x1xf32>
    %145 = vector.broadcast %13 : vector<1x32xf32> to vector<16x32xf32>
    %146 = arith.mulf %139, %145 : vector<16x32xf32>
    %cst_62 = arith.constant dense<0.000000e+00> : vector<16xf32>
    %147 = vector.multi_reduction <add>, %146, %cst_62 [1] : vector<16x32xf32> to vector<16xf32>
    %148 = vector.shape_cast %147 : vector<16xf32> to vector<16x1xf32>
    %149 = arith.addf %144, %148 : vector<16x1xf32>
    %150 = vector.broadcast %14 : vector<1x1xf32> to vector<16x1xf32>
    %151 = arith.addf %149, %150 : vector<16x1xf32>
    %cst_63 = arith.constant dense<0.000000e+00> : vector<1x16xf32>
    %152 = tpu.matmul %151, %28, %cst_63 {dimension_numbers = #tpu.dot_dimension_numbers<[0], [0], [1], [1], [0, 1, 1, 1], [], []>} : vector<16x1xf32>, vector<16x16xf32>, vector<1x16xf32> -> vector<1x16xf32>
    %cst_64 = arith.constant dense<0.000000e+00> : vector<16x16xf32>
    %153 = tpu.matmul %22, %22, %cst_64 {dimension_numbers = #tpu.dot_dimension_numbers<[1], [1], [0], [0], [0, 0, 1, 0], [], []>} : vector<16x2xf32>, vector<16x2xf32>, vector<16x16xf32> -> vector<16x16xf32>
    %cst_65 = arith.constant dense<0.000000e+00> : vector<2xf32>
    %154 = vector.multi_reduction <add>, %22, %cst_65 [0] : vector<16x2xf32> to vector<2xf32>
    %155 = vector.shape_cast %154 : vector<2xf32> to vector<1x2xf32>
    %cst_66 = arith.constant 5.000000e-01 : f32
    %156 = vector.broadcast %cst_66 : f32 to vector<1x2xf32>
    %157 = arith.mulf %156, %155 : vector<1x2xf32>
    %158 = math.ceil %157 : vector<1x2xf32>
    %159 = vector.broadcast %158 : vector<1x2xf32> to vector<16x2xf32>
    %160 = arith.mulf %22, %159 : vector<16x2xf32>
    %cst_67 = arith.constant dense<0.000000e+00> : vector<16xf32>
    %161 = vector.multi_reduction <add>, %160, %cst_67 [1] : vector<16x2xf32> to vector<16xf32>
    %162 = vector.shape_cast %161 : vector<16xf32> to vector<16x1xf32>
    %163 = vector.broadcast %152 : vector<1x16xf32> to vector<16x16xf32>
    %164 = vector.broadcast %151 : vector<16x1xf32> to vector<16x16xf32>
    %165 = arith.cmpf ogt, %163, %164 : vector<16x16xf32>
    %166 = vector.broadcast %152 : vector<1x16xf32> to vector<16x16xf32>
    %167 = vector.broadcast %151 : vector<16x1xf32> to vector<16x16xf32>
    %168 = arith.cmpf oeq, %166, %167 : vector<16x16xf32>
    %169 = arith.cmpi slt, %24, %23 : vector<16x16xi32>
    %170 = arith.andi %168, %169 : vector<16x16xi1>
    %171 = arith.ori %165, %170 : vector<16x16xi1>
    %cst_68 = arith.constant 1.000000e+00 : f32
    %cst_69 = arith.constant 0.000000e+00 : f32
    %172 = vector.broadcast %cst_68 : f32 to vector<16x16xf32>
    %173 = vector.broadcast %cst_69 : f32 to vector<16x16xf32>
    %174 = arith.select %171, %172, %173 : vector<16x16xi1>, vector<16x16xf32>
    %175 = arith.mulf %153, %174 : vector<16x16xf32>
    %cst_70 = arith.constant dense<0.000000e+00> : vector<16xf32>
    %176 = vector.multi_reduction <add>, %175, %cst_70 [1] : vector<16x16xf32> to vector<16xf32>
    %177 = vector.shape_cast %176 : vector<16xf32> to vector<16x1xf32>
    %178 = arith.cmpf olt, %177, %162 : vector<16x1xf32>
    %cst_71 = arith.constant 1.000000e+00 : f32
    %cst_72 = arith.constant 0.000000e+00 : f32
    %179 = vector.broadcast %cst_71 : f32 to vector<16x1xf32>
    %180 = vector.broadcast %cst_72 : f32 to vector<16x1xf32>
    %181 = arith.select %178, %179, %180 : vector<16x1xi1>, vector<16x1xf32>
    %182 = math.tanh %151 : vector<16x1xf32>
    %183 = vector.broadcast %182 : vector<16x1xf32> to vector<16x32xf32>
    %184 = arith.mulf %139, %183 : vector<16x32xf32>
    %185 = vector.broadcast %181 : vector<16x1xf32> to vector<16x2xf32>
    %186 = arith.mulf %22, %185 : vector<16x2xf32>
    %cst_73 = arith.constant dense<0.000000e+00> : vector<2x32xf32>
    %187 = tpu.matmul %186, %184, %cst_73 {dimension_numbers = #tpu.dot_dimension_numbers<[0], [0], [1], [1], [0, 1, 1, 1], [], []>} : vector<16x2xf32>, vector<16x32xf32>, vector<2x32xf32> -> vector<2x32xf32>
    %cst_74 = arith.constant 1.000000e+00 : f32
    %188 = vector.broadcast %cst_74 : f32 to vector<16x1xf32>
    %cst_75 = arith.constant dense<0.000000e+00> : vector<2x1xf32>
    %189 = tpu.matmul %186, %188, %cst_75 {dimension_numbers = #tpu.dot_dimension_numbers<[0], [0], [1], [1], [0, 1, 1, 1], [], []>} : vector<16x2xf32>, vector<16x1xf32>, vector<2x1xf32> -> vector<2x1xf32>
    %cst_76 = arith.constant 1.000000e+00 : f32
    %190 = vector.broadcast %cst_76 : f32 to vector<2x1xf32>
    %191 = arith.maximumf %189, %190 : vector<2x1xf32>
    %192 = vector.broadcast %191 : vector<2x1xf32> to vector<2x32xf32>
    %193 = arith.divf %187, %192 : vector<2x32xf32>
    %194 = vector.extract_strided_slice %186 {offsets = [0, 0], sizes = [16, 1], strides = [1, 1]} : vector<16x2xf32> to vector<16x1xf32>
    %cst_77 = arith.constant 0.000000e+00 : f32
    %195 = vector.broadcast %cst_77 : f32 to vector<16x1xf32>
    %196 = arith.cmpf ogt, %194, %195 : vector<16x1xf32>
    %cst_78 = arith.constant -1.000000e+30 : f32
    %197 = vector.shape_cast %196 : vector<16x1xi1> to vector<16x1xi1>
    %198 = vector.broadcast %197 : vector<16x1xi1> to vector<16x32xi1>
    %199 = vector.broadcast %cst_78 : f32 to vector<16x32xf32>
    %200 = arith.select %198, %184, %199 : vector<16x32xi1>, vector<16x32xf32>
    %cst_79 = arith.constant dense<0xFF800000> : vector<32xf32>
    %201 = vector.multi_reduction <maximumf>, %200, %cst_79 [0] : vector<16x32xf32> to vector<32xf32>
    %202 = vector.shape_cast %201 : vector<32xf32> to vector<1x32xf32>
    %203 = vector.extract_strided_slice %186 {offsets = [0, 1], sizes = [16, 1], strides = [1, 1]} : vector<16x2xf32> to vector<16x1xf32>
    %cst_80 = arith.constant 0.000000e+00 : f32
    %204 = vector.broadcast %cst_80 : f32 to vector<16x1xf32>
    %205 = arith.cmpf ogt, %203, %204 : vector<16x1xf32>
    %cst_81 = arith.constant -1.000000e+30 : f32
    %206 = vector.shape_cast %205 : vector<16x1xi1> to vector<16x1xi1>
    %207 = vector.broadcast %206 : vector<16x1xi1> to vector<16x32xi1>
    %208 = vector.broadcast %cst_81 : f32 to vector<16x32xf32>
    %209 = arith.select %207, %184, %208 : vector<16x32xi1>, vector<16x32xf32>
    %cst_82 = arith.constant dense<0xFF800000> : vector<32xf32>
    %210 = vector.multi_reduction <maximumf>, %209, %cst_82 [0] : vector<16x32xf32> to vector<32xf32>
    %211 = vector.shape_cast %210 : vector<32xf32> to vector<1x32xf32>
    %212 = tpu.concatenate %202, %211 in 0 : vector<1x32xf32>, vector<1x32xf32> -> vector<2x32xf32>
    %213 = tpu.concatenate %212, %193 in 1 : vector<2x32xf32>, vector<2x32xf32> -> vector<2x64xf32>
    %cst_83 = arith.constant 0.000000e+00 : f32
    %214 = vector.broadcast %cst_83 : f32 to vector<2x64xf32>
    %215 = tpu.concatenate %213, %214 in 1 : vector<2x64xf32>, vector<2x64xf32> -> vector<2x128xf32>
    %c0_84 = arith.constant 0 : index
    %c0_85 = arith.constant 0 : index
    %c0_86 = arith.constant 0 : index
    %216 = vector.load %arg6[%c0_84, %c0_85, %c0_86] : memref<1x2x128xf32, #tpu.memory_space<vmem>>, vector<1x2x128xf32>
    %217 = vector.shape_cast %216 : vector<1x2x128xf32> to vector<2x128xf32>
    %218 = vector.shape_cast %215 : vector<2x128xf32> to vector<1x2x128xf32>
    tpu.vector_store %arg6[%c0_84, %c0_85, %c0_86], %218 {strides = array<i32>} : memref<1x2x128xf32, #tpu.memory_space<vmem>>, vector<1x2x128xf32>,
    return
  }
  func.func @transform_0(%arg0: i32) -> (i32, i32) {
    %c0_i32 = arith.constant 0 : i32
    %c0_i32_0 = arith.constant 0 : i32
    %c0_i32_1 = arith.constant 0 : i32
    return %c0_i32, %c0_i32_0 : i32, i32
  }
  func.func @transform_1(%arg0: i32) -> (i32, i32, i32) {
    %c0_i32 = arith.constant 0 : i32
    %c0_i32_0 = arith.constant 0 : i32
    %c0_i32_1 = arith.constant 0 : i32
    return %arg0, %c0_i32, %c0_i32_0 : i32, i32, i32
  }
  func.func @transform_2(%arg0: i32) -> (i32, i32, i32) {
    %c0_i32 = arith.constant 0 : i32
    %c0_i32_0 = arith.constant 0 : i32
    %c0_i32_1 = arith.constant 0 : i32
    return %arg0, %c0_i32, %c0_i32_0 : i32, i32, i32
  }
  func.func @transform_3(%arg0: i32) -> (i32, i32, i32) {
    %c0_i32 = arith.constant 0 : i32
    %c0_i32_0 = arith.constant 0 : i32
    %c0_i32_1 = arith.constant 0 : i32
    return %arg0, %c0_i32, %c0_i32_0 : i32, i32, i32
  }
  func.func @transform_4(%arg0: i32) -> (i32, i32, i32) {
    %c0_i32 = arith.constant 0 : i32
    %c0_i32_0 = arith.constant 0 : i32
    %c0_i32_1 = arith.constant 0 : i32
    return %arg0, %c0_i32, %c0_i32_0 : i32, i32, i32
  }
  func.func @transform_5(%arg0: i32) -> (i32, i32, i32) {
    %c0_i32 = arith.constant 0 : i32
    %c0_i32_0 = arith.constant 0 : i32
    %c0_i32_1 = arith.constant 0 : i32
    return %arg0, %c0_i32, %c0_i32_0 : i32, i32, i32
  }
}

</mosaic_0001>

<bundles_post_ra>
// kernel: tpu_custom_call.1
= control target key start
LH: loop header
LB: loop body
LE: loop exit
PB: predicated region body
PF: predicated region fallthrough
CT: control target
= control target key end

     0   :  { %vm56_vm0 = vcmask 64512   ;;  %s1908_s0 = inlined_call_operand.vmem [shape: f32[56,32], index: 0, kind: input, shape index: {}]   ;;  %s1909_s1 = inlined_call_operand.vmem [shape: f32[1,16,8], index: 1, kind: input, shape index: {}]   ;;  %s1910_s2 = inlined_call_operand.vmem [shape: f32[1,16,16], index: 2, kind: input, shape index: {}]   ;;  %s1911_s3 = inlined_call_operand.vmem [shape: f32[1,16,16], index: 3, kind: input, shape index: {}]   ;;  %s1912_s4 = inlined_call_operand.vmem [shape: f32[1,16,2], index: 4, kind: input, shape index: {}]   ;;  %s1913_s5 = inlined_call_operand.hbm [shape: f32[1,2,128], index: 5, kind: output, shape index: {}]  }
   0x1   :  { %v21_v0 = vld [vmem:[%s1908_s0] sm:$0xff]  ;;  %v40_v2 = vld [vmem:[%s1909_s1 + $0x8] sm:$0xff] }
   0x2   :  { %v39_v1 = vld [vmem:[%s1909_s1] sm:$0xff]  ;;  %1436 = vmatprep.subr.mxu0 %v21_v0 }
   0x3   :  { %1438 = vmatprep.mubr.msk.f32.mxu0 %vm56_vm0, %v39_v1 }
   0x4   :  { %10 = vsyncpa [#allocation3], 0  ;;  %1437 = vmatpush3.msra.mxu0 %v21_v0  ;;  %v1618_v3 = vmov 0.0|0.0   ;;  %vm1619_vm1 = vmmov 0   ;;  %v1620_v4 = vmov 0.0   ;;  %vm144_vm2 = vcmask 261120  }
   0x5   :  { %1439 = vmatmul.mubr.msk.f32.vlgmr.msra.gmra.mrb[0].mxu0 %vm56_vm0, %v40_v2  ;;  %1515 = vmatprep.subr.bf16.mxu1 %v1618_v3  ;;  %v1362_v5 = vld [vmem:[%s1908_s0 + $0x29] ss:$0 sm:$0xff]  ;;  %vm1673_vm3 = vmpackc.low %vm144_vm2, %vm144_vm2  ;;  %v26_v14 = vld [vmem:[%s1908_s0 + $0x28] sm:$0x1]  ;;  %v47_v15 = vlaneseq  ;;  %vm246_vm7 = vcmask 130048   ;;  %vm956_vm11 = vcmask 15360  }
   0x6   :  { %1445 = vmatprep.mubr.msk.f32.mxu1 %vm1619_vm1, %v1620_v4  ;;  %v1698_v22 = vld [vmem:[%s1910_s2] sm:$0xff]  ;;  %v1704_v26 = vld [vmem:[%s1910_s2 + $0x8] sm:$0xff]  ;;  %v23_v54 = vld [vmem:[%s1908_s0 + $0x10] sm:$0xff]  ;;  %s1625_s14 = smov [#allocation2]  }
   0x7   :  { %v1689_v16 = vshrl.u32 %v47_v15, 7  ;;  %vm242_vm4 = vcmp.gt.f32.partialorder %v1698_v22, 0.0  ;;  %vm243_vm8 = vcmp.gt.f32.partialorder %v1704_v26, 0.0  ;;  %v22_v53 = vld [vmem:[%s1908_s0 + $0x8] sm:$0xff]  ;;  %v24_v56 = vld [vmem:[%s1908_s0 + $0x18] sm:$0xff]  ;;  %v25_v57 = vld [vmem:[%s1908_s0 + $0x20] sm:$0xff] }
   0x8   :  { %v1523_v55 = vpack.c.bf16 %v23_v54, %v22_v53  ;;  %v1527_v58 = vpack.c.bf16 %v25_v57, %v24_v56  ;;  %v1366_v59 = vld [vmem:[%s1908_s0 + $0x2a] ss:$0 sm:$0xff]  ;;  %vm1547_vm12 = vmpackc.low %vm956_vm11, %vm956_vm11  ;;  %s1352_s15 = sshll.u32 %s1625_s14, 4  ;;  %s1353_s15 = int_to_ptr.vmem [resolvable:$true] %s1352_s15 }
   0x9   :  { %v1692_v18 = vsub.s32 0, %v1689_v16  ;;  %s1594_s16 = scalar_lea.vmem %s1353_s15, 32  ;;  %p1599_p1 = scmp.lt.s32.totalorder %s1353_s15, %s1353_s15 }
   0xa   :  { %p1595_p0 = scmp.ne.s32.totalorder %s1353_s15, %s1594_s16  ;;  %p1600_p2 = scmp.lt.s32.totalorder %s1594_s16, %s1594_s16 }
   0xc   :  { %p1601_p3 = por %p1600_p2, %p1599_p1 }
   0xe   :  { %p1602_p4 = pnand %p1601_p3, %p1595_p0 }
  0xd8   :  { %v1440_v6 = vpop.f32.mrb[0].mxu0 }
  0xd9   :  { %v129_v7 = vpop.f32.mrb[1].mxu0  ;;  %v143_v11 = vmul.f32 %v1440_v6, %v1362_v5 }
  0xda   :  { %v1516_v9 = vpack.c.bf16 %v1440_v6, %v129_v7  ;;  %v142_v10 = vmul.f32 %v1362_v5, %v129_v7 }
  0xdb   :  { %v148_v13 = vsel %vm144_vm2, %v143_v11, 0.0 }
  0xdc   :  { %1518 = vmatpush3.bf16.xpose.msk.msra.mxu1 %vm1673_vm3, %v1516_v9  ;;  %1520 = vmatprep.subr.bf16.mxu0 %v1516_v9  ;;  %v145_v12 = vsel %vm144_vm2, %v142_v10, 0.0 }
  0xdd   :  { %1522 = vmatpush3.bf16.msra.mxu0 %v1516_v9  ;;  %146 = vadd.xlane.f32.xlu0 %v145_v12 }
  0xde   :  { %1531 = vmatprep.subr.bf16.mxu1 %v1618_v3  ;;  %1524 = vmatprep.subr.bf16.mxu0 %v1523_v55 }
  0xe1   :  { %149 = vadd.xlane.f32.xlu0 %v148_v13 }
  0xe3   :  { %1446 = vmatmul.mubr.msk.f32.vlgmr.msra.gmra.mrb[0].mxu1 %vm144_vm2, %v26_v14 }
  0xe4   :  { %1470 = vmatprep.mubr.msk.f32.mxu1 %vm1619_vm1, %v1620_v4 }
 0x16a   :  { %v147_v17 = vpop.xlane.xlu0 %146 }
 0x16e   :  { %v150_v23 = vpop.xlane.xlu0 %149 }
 0x1b6   :  { %v226_v19 = vpop.f32.mrb[0].mxu1 }
 0x1b7   :  { %v233_v20 = vrot.slane %v226_v19, %v1692_v18  ;;  %v1447_v21 = vpop.f32.mrb[1].mxu1 }
 0x1b9   :  { %v234_v24 = vadd.f32 %v233_v20, %v147_v17  ;;  %v235_v25 = vadd.f32 %v233_v20, %v150_v23 }
 0x1bb   :  { %vm236_vm5 = vcmp.gt.f32.partialorder %v234_v24, 0.0  ;;  %v238_v27 = vmul.f32 0.2, %v234_v24  ;;  %vm237_vm6 = vcmp.gt.f32.partialorder %v235_v25, 0.0  ;;  %v239_v28 = vmul.f32 0.2, %v235_v25 }
 0x1bd   :  { %v240_v29 = vsel %vm236_vm5, %v234_v24, %v238_v27  ;;  %v241_v30 = vsel %vm237_vm6, %v235_v25, %v239_v28 }
 0x1be   :  { %v244_v31 = vsel %vm242_vm4, %v240_v29, -1e+30  ;;  %v245_v33 = vsel %vm243_vm8, %v241_v30, -1e+30 }
 0x1bf   :  { %v247_v32 = vsel %vm246_vm7, %v244_v31, -inf  ;;  %v250_v34 = vsel %vm246_vm7, %v245_v33, -inf }
 0x1c0   :  { %248 = vmax.xlane.f32.xlu1 %v247_v32 }
 0x1c4   :  { %251 = vmax.xlane.f32.xlu1 %v250_v34  ;;  %v1369_v34 = vld [vmem:[%s1908_s0 + $0x2b] ss:$0 sm:$0xff] }
 0x24d   :  { %v249_v35 = vpop.xlane.xlu1 %248 }
 0x24e   :  { %v253_v36 = vsub.f32 %v244_v31, %v249_v35 }
 0x250   :  { %v255_v37 = vmul.f32 1.442695, %v253_v36 }
 0x251   :  { %v252_v38 = vpop.xlane.xlu1 %251 }
 0x252   :  { %1568 = vpow2.f32 %v255_v37  ;;  %v254_v39 = vsub.f32 %v245_v33, %v252_v38  ;;  %v1370_v37 = vld [vmem:[%s1908_s0 + $0x2c] ss:$0 sm:$0xff] }
 0x254   :  { %v257_v40 = vmul.f32 1.442695, %v254_v39 }
 0x256   :  { %1570 = vpow2.f32 %v257_v40 }
 0x25c   :  { %v1569_v41 = vpop.eup %1568 }
 0x25d   :  { %v259_v42 = vmul.f32 %v1569_v41, %v1698_v22 }
 0x25f   :  { %v261_v43 = vsel %vm246_vm7, %v259_v42, 0.0 }
 0x260   :  { %v1571_v44 = vpop.eup %1570  ;;  %262 = vadd.xlane.f32.xlu0 %v261_v43 }
 0x261   :  { %v260_v45 = vmul.f32 %v1571_v44, %v1704_v26  ;;  %v1373_v44 = vld [vmem:[%s1908_s0 + $0x2e] ss:$0 sm:$0xff] }
 0x263   :  { %v264_v46 = vsel %vm246_vm7, %v260_v45, 0.0 }
 0x264   :  { %265 = vadd.xlane.f32.xlu1 %v264_v46 }
 0x2ed   :  { %v263_v47 = vpop.xlane.xlu0 %262 }
 0x2ee   :  { %1572 = vrcp.f32 %v263_v47 }
 0x2f1   :  { %v266_v48 = vpop.xlane.xlu1 %265 }
 0x2f2   :  { %1574 = vrcp.f32 %v266_v48 }
 0x2f8   :  { %v1573_v49 = vpop.eup %1572 }
 0x2f9   :  { %v268_v50 = vmul.f32 %v1573_v49, %v259_v42 }
 0x2fb   :  { %1452 = vmatprep.mubr.msk.f32.mxu0 %vm246_vm7, %v268_v50 }
 0x2fc   :  { %v1575_v51 = vpop.eup %1574 }
 0x2fd   :  { %v270_v52 = vmul.f32 %v1575_v51, %v260_v45 }
 0x2ff   :  { %1453 = vmatmul.mubr.msk.f32.vlgmr.msra.gmra.mrb[2].mxu0 %vm246_vm7, %v270_v52  ;;  %v31_v52 = vld [vmem:[%s1908_s0 + $0x2d] sm:$0x1] }
 0x300   :  { %1526 = vmatpush3.bf16.msra.mxu0 %v1523_v55 }
 0x301   :  { %1528 = vmatprep.subr.bf16.mxu0 %v1527_v58 }
 0x304   :  { %1530 = vmatpush3.bf16.msra.mxu0 %v1527_v58 }
 0x3d2   :  { %v1454_v60 = vpop.f32.mrb[2].mxu0 }
 0x3d3   :  { %v353_v61 = vadd.f32 %v1454_v60, %v1366_v59  ;;  %v347_v62 = vpop.f32.mrb[3].mxu0 }
 0x3d4   :  { %v348_v63 = vadd.f32 %v1366_v59, %v347_v62 }
 0x3d5   :  { %v357_v0 = vsel %vm144_vm2, %v353_v61, 0.0 }
 0x3d6   :  { %v356_v1 = vsel %vm144_vm2, %v348_v63, 0.0 }
 0x3d7   :  { %v358_v2 = vadd.f32 %v357_v0, %v356_v1 }
 0x3d9   :  { %v359_v5 = vrot.slane %v358_v2, 4 }
 0x3db   :  { %v360_v6 = vadd.f32 %v359_v5, %v358_v2 }
 0x3dd   :  { %v361_v7 = vrot.slane %v360_v6, 2 }
 0x3df   :  { %v362_v9 = vadd.f32 %v361_v7, %v360_v6 }
 0x3e1   :  { %v363_v10 = vrot.slane %v362_v9, 1 }
 0x3e3   :  { %v364_v11 = vadd.f32 %v363_v10, %v362_v9 }
 0x3e5   :  { %v366_v12 = vmul.f32 0.0625, %v364_v11 }
 0x3e7   :  { %v367_v13 = vsub.f32 %v348_v63, %v366_v12  ;;  %v368_v14 = vsub.f32 %v353_v61, %v366_v12 }
 0x3e9   :  { %v369_v17 = vmul.f32 %v367_v13, %v367_v13  ;;  %v370_v19 = vmul.f32 %v368_v14, %v368_v14 }
 0x3eb   :  { %v371_v20 = vsel %vm144_vm2, %v369_v17, 0.0  ;;  %v372_v21 = vsel %vm144_vm2, %v370_v19, 0.0 }
 0x3ec   :  { %v373_v23 = vadd.f32 %v372_v21, %v371_v20 }
 0x3ee   :  { %v374_v24 = vrot.slane %v373_v23, 4 }
 0x3f0   :  { %v375_v25 = vadd.f32 %v374_v24, %v373_v23 }
 0x3f2   :  { %v376_v27 = vrot.slane %v375_v25, 2 }
 0x3f4   :  { %v377_v28 = vadd.f32 %v376_v27, %v375_v25 }
 0x3f6   :  { %v378_v29 = vrot.slane %v377_v28, 1 }
 0x3f8   :  { %v379_v30 = vadd.f32 %v378_v29, %v377_v28 }
 0x3fa   :  { %v380_v31 = vmul.f32 0.0625, %v379_v30 }
 0x3fc   :  { %v381_v32 = vadd.f32 1e-05, %v380_v31 }
 0x3fe   :  { %1576 = vrsqrt.f32 %v381_v32 }
 0x408   :  { %v1577_v33 = vpop.eup %1576 }
 0x409   :  { %v383_v35 = vmul.f32 %v1577_v33, %v367_v13  ;;  %v384_v36 = vmul.f32 %v1577_v33, %v368_v14 }
 0x40b   :  { %v389_v38 = vmul.f32 %v1369_v34, %v383_v35  ;;  %v390_v39 = vmul.f32 %v1369_v34, %v384_v36 }
 0x40d   :  { %v1744_v40 = vadd.f32 %v1370_v37, %v389_v38  ;;  %v1746_v41 = vadd.f32 %v1370_v37, %v390_v39 }
 0x40f   :  { %v397_v42 = vmax.f32 %v1744_v40, 0.0  ;;  %v398_v43 = vmax.f32 %v1746_v41, 0.0  ;;  %v44_v41 = vld [vmem:[%s1911_s3 + $0x8] sm:$0xff] }
 0x411   :  { %1463 = vmatprep.mubr.msk.f32.mxu0 %vm144_vm2, %v397_v42 }
 0x412   :  { %1464 = vmatmul.mubr.msk.f32.vlgmr.msra.gmra.mrb[4].mxu0 %vm144_vm2, %v398_v43 }
 0x4e5   :  { %v1465_v45 = vpop.f32.mrb[4].mxu0 }
 0x4e6   :  { %v485_v46 = vmul.f32 %v1465_v45, %v1373_v44  ;;  %v471_v47 = vpop.f32.mrb[5].mxu0 }
 0x4e7   :  { %v484_v48 = vmul.f32 %v1373_v44, %v471_v47  ;;  %v1532_v49 = vpack.c.bf16 %v1465_v45, %v471_v47 }
 0x4e8   :  { %v489_v50 = vsel %vm144_vm2, %v485_v46, 0.0 }
 0x4e9   :  { %490 = vadd.xlane.f32.xlu1 %v489_v50  ;;  %1534 = vmatpush3.bf16.xpose.msk.msra.mxu1 %vm1673_vm3, %v1532_v49  ;;  %v486_v51 = vsel %vm144_vm2, %v484_v48, 0.0 }
 0x4ea   :  { %1536 = vmatprep.subr.bf16.mxu0 %v1532_v49  ;;  %487 = vadd.xlane.f32.xlu0 %v486_v51 }
 0x4eb   :  { %1538 = vmatpush3.bf16.msra.mxu0 %v1532_v49 }
 0x4ec   :  { %1543 = vmatprep.subr.bf16.mxu0 %v1618_v3 }
 0x4f0   :  { %1471 = vmatmul.mubr.msk.f32.vlgmr.msra.gmra.mrb[2].mxu1 %vm144_vm2, %v31_v52 }
 0x576   :  { %v491_v56 = vpop.xlane.xlu1 %490 }
 0x577   :  { %v488_v8 = vpop.xlane.xlu0 %487 }
 0x5c3   :  { %v567_v53 = vpop.f32.mrb[2].mxu1 }
 0x5c4   :  { %v574_v54 = vrot.slane %v567_v53, %v1692_v18  ;;  %v1472_v55 = vpop.f32.mrb[3].mxu1 }
 0x5c6   :  { %v575_v57 = vadd.f32 %v574_v54, %v488_v8  ;;  %v576_v58 = vadd.f32 %v574_v54, %v491_v56 }
 0x5c8   :  { %vm578_vm9 = vcmp.gt.f32.partialorder %v576_v58, 0.0  ;;  %v580_v59 = vmul.f32 0.2, %v576_v58  ;;  %vm577_vm10 = vcmp.gt.f32.partialorder %v575_v57, 0.0  ;;  %v579_v60 = vmul.f32 0.2, %v575_v57 }
 0x5ca   :  { %v582_v61 = vsel %vm578_vm9, %v576_v58, %v580_v59  ;;  %v581_v62 = vsel %vm577_vm10, %v575_v57, %v579_v60 }
 0x5cb   :  { %v584_v63 = vsel %vm243_vm8, %v582_v61, -1e+30  ;;  %v583_v0 = vsel %vm242_vm4, %v581_v62, -1e+30  ;;  %v1380_v62 = vld [vmem:[%s1908_s0 + $0x30] ss:$0 sm:$0xff] }
 0x5cc   :  { %v588_v1 = vsel %vm246_vm7, %v584_v63, -inf  ;;  %v585_v2 = vsel %vm246_vm7, %v583_v0, -inf }
 0x5cd   :  { %589 = vmax.xlane.f32.xlu1 %v588_v1  ;;  %586 = vmax.xlane.f32.xlu0 %v585_v2  ;;  %v1381_v1 = vld [vmem:[%s1908_s0 + $0x31] ss:$0 sm:$0xff] }
 0x65a   :  { %v590_v5 = vpop.xlane.xlu1 %589  ;;  %v587_v6 = vpop.xlane.xlu0 %586 }
 0x65b   :  { %v592_v7 = vsub.f32 %v584_v63, %v590_v5  ;;  %v591_v9 = vsub.f32 %v583_v0, %v587_v6 }
 0x65d   :  { %v595_v10 = vmul.f32 1.442695, %v592_v7  ;;  %v593_v11 = vmul.f32 1.442695, %v591_v9 }
 0x65f   :  { %1578 = vpow2.f32 %v595_v10 }
 0x660   :  { %1580 = vpow2.f32 %v593_v11  ;;  %v1385_v11 = vld [vmem:[%s1908_s0 + $0x33] ss:$0 sm:$0xff] }
 0x669   :  { %v1579_v12 = vpop.eup %1578 }
 0x66a   :  { %v1581_v13 = vpop.eup %1580  ;;  %v598_v14 = vmul.f32 %v1579_v12, %v1704_v26  ;;  %v1377_v26 = vld [vmem:[%s1908_s0 + $0x2f] ss:$0 sm:$0xff] }
 0x66b   :  { %v597_v17 = vmul.f32 %v1581_v13, %v1698_v22  ;;  %v43_v22 = vld [vmem:[%s1911_s3] sm:$0xff] }
 0x66c   :  { %v602_v19 = vsel %vm246_vm7, %v598_v14, 0.0  ;;  %1484 = vmatprep.mubr.msk.f32.mxu1 %vm246_vm7, %v43_v22  ;;  %v1830_v22 = vld [vmem:[%s1912_s4] sm:$0xff] }
 0x66d   :  { %603 = vadd.xlane.f32.xlu1 %v602_v19  ;;  %v599_v20 = vsel %vm246_vm7, %v597_v17, 0.0  ;;  %v1384_v19 = vld [vmem:[%s1908_s0 + $0x32] ss:$0 sm:$0xff] }
 0x66e   :  { %600 = vadd.xlane.f32.xlu0 %v599_v20 }
 0x6fa   :  { %v604_v21 = vpop.xlane.xlu1 %603 }
 0x6fb   :  { %1582 = vrcp.f32 %v604_v21  ;;  %v601_v23 = vpop.xlane.xlu0 %600 }
 0x6fc   :  { %1584 = vrcp.f32 %v601_v23 }
 0x705   :  { %v1583_v24 = vpop.eup %1582 }
 0x706   :  { %v1585_v25 = vpop.eup %1584  ;;  %v608_v27 = vmul.f32 %v1583_v24, %v598_v14 }
 0x707   :  { %v606_v28 = vmul.f32 %v1585_v25, %v597_v17 }
 0x709   :  { %1477 = vmatprep.mubr.msk.f32.mxu0 %vm246_vm7, %v606_v28  ;;  %v1621_v28 = vmov 0  }
 0x70a   :  { %1478 = vmatmul.mubr.msk.f32.vlgmr.msra.gmra.mrb[6].mxu0 %vm246_vm7, %v608_v27  ;;  %1565 = vset.pattern.permute.xlu1 %v1621_v28 }
 0x70b   :  { %1491 = vmatprep.mubr.msk.f32.mxu0 %vm1619_vm1, %v1620_v4 }
 0x7dd   :  { %v1479_v29 = vpop.f32.mrb[6].mxu0 }
 0x7de   :  { %v691_v30 = vadd.f32 %v1479_v29, %v1377_v26  ;;  %v685_v31 = vpop.f32.mrb[7].mxu0  ;;  %v49_v29 = vadd.s32 8, %v1689_v16 }
 0x7df   :  { %v686_v32 = vadd.f32 %v1377_v26, %v685_v31  ;;  %v1837_v26 = vld [vmem:[%s1912_s4 + $0x8] sm:$0xff] }
 0x7e0   :  { %v695_v33 = vsel %vm144_vm2, %v691_v30, 0.0  ;;  %v1546_v31 = vpack.c.bf16 %v1837_v26, %v1830_v22 }
 0x7e1   :  { %v694_v34 = vsel %vm144_vm2, %v686_v32, 0.0 }
 0x7e2   :  { %v696_v35 = vadd.f32 %v695_v33, %v694_v34  ;;  %v1038_v33 = vsel %vm956_vm11, %v1830_v22, 0.0  ;;  %v1039_v34 = vsel %vm956_vm11, %v1837_v26, 0.0 }
 0x7e4   :  { %v697_v36 = vrot.slane %v696_v35, 4 }
 0x7e6   :  { %v698_v37 = vadd.f32 %v697_v36, %v696_v35  ;;  %v1386_v35 = vld [vmem:[%s1908_s0 + $0x34] ss:$0 sm:$0xff]  ;;  %s1624_s0 = smov 32  }
 0x7e8   :  { %v699_v38 = vrot.slane %v698_v37, 2 }
 0x7ea   :  { %v700_v39 = vadd.f32 %v699_v38, %v698_v37  ;;  %v1040_v38 = vadd.f32 %v1039_v34, %v1038_v33 }
 0x7ec   :  { %v701_v44 = vrot.slane %v700_v39, 1 }
 0x7ee   :  { %v702_v45 = vadd.f32 %v701_v44, %v700_v39 }
 0x7f0   :  { %v703_v46 = vmul.f32 0.0625, %v702_v45 }
 0x7f2   :  { %v704_v47 = vsub.f32 %v686_v32, %v703_v46  ;;  %v705_v48 = vsub.f32 %v691_v30, %v703_v46  ;;  %v1841_v30 = vand.u32 127, %v47_v15  ;;  %v1622_v32 = vmov 1.0|1.0  }
 0x7f4   :  { %v706_v49 = vmul.f32 %v704_v47, %v704_v47  ;;  %v707_v50 = vmul.f32 %v705_v48, %v705_v48  ;;  %vm52_vm13 = vcmp.eq.s32.totalorder %v1689_v16, %v1841_v30  ;;  %vm53_vm14 = vcmp.eq.s32.totalorder %v49_v29, %v1841_v30 }
 0x7f5   :  { %vm1544_vm15 = vmpackc.low %vm53_vm14, %vm52_vm13  ;;  %vm1076_vm0 = vcmp.lt.s32.totalorder %v1841_v30, %v49_v29  ;;  %vm1075_vm6 = vcmp.lt.s32.totalorder %v1841_v30, %v1689_v16 }
 0x7f6   :  { %v708_v51 = vsel %vm144_vm2, %v706_v49, 0.0  ;;  %v709_v52 = vsel %vm144_vm2, %v707_v50, 0.0  ;;  %1545 = vmatpush3.bf16.msk.msra.mxu0 %vm1544_vm15, %v1622_v32 }
 0x7f7   :  { %v710_v53 = vadd.f32 %v709_v52, %v708_v51  ;;  %1552 = vmatprep.subr.bf16.mxu0 %v1618_v3 }
 0x7f9   :  { %v711_v54 = vrot.slane %v710_v53, 4 }
 0x7fb   :  { %v712_v55 = vadd.f32 %v711_v54, %v710_v53 }
 0x7fd   :  { %v713_v56 = vrot.slane %v712_v55, 2 }
 0x7ff   :  { %v714_v8 = vadd.f32 %v713_v56, %v712_v55 }
 0x801   :  { %v715_v57 = vrot.slane %v714_v8, 1 }
 0x803   :  { %v716_v58 = vadd.f32 %v715_v57, %v714_v8 }
 0x805   :  { %v717_v59 = vmul.f32 0.0625, %v716_v58 }
 0x807   :  { %v718_v60 = vadd.f32 1e-05, %v717_v59 }
 0x809   :  { %1586 = vrsqrt.f32 %v718_v60 }
 0x813   :  { %v1587_v61 = vpop.eup %1586 }
 0x814   :  { %v720_v63 = vmul.f32 %v1587_v61, %v704_v47  ;;  %v721_v0 = vmul.f32 %v1587_v61, %v705_v48  ;;  %v1041_v47 = vrot.slane %v1040_v38, 4 }
 0x816   :  { %v726_v2 = vmul.f32 %v1380_v62, %v720_v63  ;;  %v727_v5 = vmul.f32 %v1380_v62, %v721_v0  ;;  %v1042_v49 = vadd.f32 %v1041_v47, %v1040_v38 }
 0x818   :  { %v732_v6 = vadd.f32 %v1381_v1, %v726_v2  ;;  %v733_v7 = vadd.f32 %v1381_v1, %v727_v5  ;;  %v1043_v50 = vrot.slane %v1042_v49, 2 }
 0x81a   :  { %v734_v9 = vadd.f32 %v732_v6, %v397_v42  ;;  %v735_v10 = vadd.f32 %v733_v7, %v398_v43  ;;  %v1044_v51 = vadd.f32 %v1043_v50, %v1042_v49 }
 0x81c   :  { %v1807_v12 = vmax.f32 %v734_v9, 0.0  ;;  %v1809_v13 = vmax.f32 %v735_v10, 0.0  ;;  %v1045_v52 = vrot.slane %v1044_v51, 1 }
 0x81e   :  { %v1539_v14 = vpack.c.bf16 %v1809_v13, %v1807_v12  ;;  %v835_v17 = vmul.f32 %v1385_v11, %v1807_v12  ;;  %v836_v42 = vmul.f32 %v1385_v11, %v1809_v13  ;;  %v1046_v53 = vadd.f32 %v1045_v52, %v1044_v51 }
 0x820   :  { %1540 = vmatprep.subr.bf16.mxu1 %v1539_v14  ;;  %v837_v40 = vsel %vm144_vm2, %v835_v17, 0.0  ;;  %v840_v43 = vsel %vm144_vm2, %v836_v42, 0.0  ;;  %v1047_v54 = vmul.f32 0.5, %v1046_v53 }
 0x821   :  { %838 = vadd.xlane.f32.xlu1 %v837_v40  ;;  %1542 = vmatpush3.bf16.msra.mxu1 %v1539_v14 }
 0x822   :  { %1548 = vmatprep.subr.msk.bf16.mxu1 %vm1547_vm12, %v1546_v31  ;;  %v1048_v55 = vceil.f32 %v1047_v54 }
 0x824   :  { %1485 = vmatmul.mubr.msk.f32.vlgmr.msra.gmra.mrb[4].mxu1 %vm246_vm7, %v44_v41  ;;  %v1049_v56 = vmul.f32 %v1048_v55, %v1830_v22  ;;  %v1050_v57 = vmul.f32 %v1048_v55, %v1837_v26 }
 0x825   :  { %841 = vadd.xlane.f32.xlu1 %v840_v43  ;;  %1498 = vmatprep.mubr.msk.f32.mxu1 %vm956_vm11, %v1830_v22 }
 0x826   :  { %v1051_v8 = vsel %vm956_vm11, %v1049_v56, 0.0  ;;  %v1054_v58 = vsel %vm956_vm11, %v1050_v57, 0.0 }
 0x82a   :  { %1551 = vmatpush3.bf16.xpose.msk.msra.mxu1 %vm1547_vm12, %v1546_v31 }
 0x831   :  { %1499 = vmatmul.mubr.msk.f32.vlgmr.msra.gmra.mrb[6].mxu1 %vm956_vm11, %v1837_v26 }
 0x8ae   :  { %v839_v15 = vpop.xlane.xlu1 %838 }
 0x8b2   :  { %v842_v44 = vpop.xlane.xlu1 %841 }
 0x8f7   :  { %v1486_v20 = vpop.f32.mrb[4].mxu1 }
 0x8f8   :  { %v810_v21 = vpop.f32.mrb[5].mxu1  ;;  %v824_v24 = vmul.f32 %v1486_v20, %v1384_v19 }
 0x8f9   :  { %v823_v23 = vmul.f32 %v1384_v19, %v810_v21 }
 0x8fa   :  { %v828_v27 = vsel %vm144_vm2, %v824_v24, 0.0 }
 0x8fb   :  { %v825_v25 = vsel %vm144_vm2, %v823_v23, 0.0 }
 0x8fc   :  { %826 = vadd.xlane.f32.xlu0 %v825_v25 }
 0x900   :  { %829 = vadd.xlane.f32.xlu0 %v828_v27 }
 0x904   :  { %v1500_v61 = vpop.f32.mrb[6].mxu1 }
 0x905   :  { %v1029_v62 = vpop.f32.mrb[7].mxu1 }
 0x989   :  { %v827_v36 = vpop.xlane.xlu0 %826 }
 0x98a   :  { %v843_v37 = vadd.f32 %v839_v15, %v827_v36  ;;  %v1623_v15 = vmov 1  }
 0x98c   :  { %v849_v39 = vadd.f32 %v1386_v35, %v843_v37 }
 0x98d   :  { %v830_v45 = vpop.xlane.xlu0 %829 }
 0x98e   :  { %v844_v46 = vadd.f32 %v842_v44, %v830_v45  ;;  %1063 = vperm.xlu1 %1565, %v849_v39   ;;  %851 = vxpose.xlu0.b32.start [1/2] (short) (narrow) %v849_v39, 8  ;;  %1588 = vtanh.f32 %v849_v39 }
 0x990   :  { %v850_v48 = vadd.f32 %v1386_v35, %v844_v46 }
 0x992   :  { %1068 = vperm.xlu1 %1565, %v850_v48   ;;  %852 = vxpose.xlu0.b32.end [2/2] (short) (narrow) %v850_v48, 8  ;;  %1590 = vtanh.f32 %v850_v48 }
 0x998   :  { %v1589_v59 = vpop.eup %1588 }
 0x99c   :  { %v1591_v14 = vpop.eup %1590 }
 0x9b6   :  { %1052 = vadd.xlane.f32.xlu1 %v1051_v8 }
 0x9ba   :  { %1055 = vadd.xlane.f32.xlu1 %v1054_v58 }
 0x9bb   :  { %1566 = vset.pattern.permute.xlu0 %v1621_v28 }
 0x9cb   :  { %1099 = vperm.xlu1 %1565, %v1589_v59  }
 0xa0d   :  { %v1064_v63 = vpop.permute.xlu1 %1063 }
 0xa0e   :  { %v867_v60 = vpop.trf.xlu0 }
 0xa0f   :  { %1492 = vmatmul.mubr.msk.f32.vlgmr.msra.gmra.mrb[8].mxu0 %vm246_vm7, %v867_v60 }
 0xa10   :  { %1505 = vmatprep.mubr.msk.f32.mxu0 %vm1619_vm1, %v1620_v4 }
 0xa11   :  { %v1069_v5 = vpop.permute.xlu1 %1068 }
 0xa43   :  { %v1053_v16 = vpop.xlane.xlu1 %1052 }
 0xa47   :  { %v1056_v17 = vpop.xlane.xlu1 %1055 }
 0xa4b   :  { %v1100_v40 = vpop.permute.xlu1 %1099 }
 0xa4c   :  { %v1107_v20 = vmul.f32 %v1100_v40, %v1807_v12 }
 0xae2   :  { %v952_v0 = vpop.f32.mrb[8].mxu0 }
 0xae3   :  { %v1060_v1 = vrot.slane %v952_v0, %v1692_v18  ;;  %v1493_v2 = vpop.f32.mrb[9].mxu0 }
 0xae5   :  { %vm1072_vm3 = vcmp.gt.f32.partialorder %v1060_v1, %v1069_v5  ;;  %vm1074_vm4 = vcmp.eq.f32.partialorder %v1060_v1, %v1069_v5  ;;  %vm1073_vm5 = vcmp.eq.f32.partialorder %v1060_v1, %v1064_v63  ;;  %vm1071_vm9 = vcmp.gt.f32.partialorder %v1060_v1, %v1064_v63 }
 0xae6   :  { %vm1078_vm8 = vmand %vm1074_vm4, %vm1076_vm0 }
 0xae7   :  { %vm1080_vm10 = vmor %vm1072_vm3, %vm1078_vm8 }
 0xae8   :  { %v1082_v6 = vsel %vm1080_vm10, 1.0, %v1620_v4  ;;  %vm1077_vm11 = vmand %vm1073_vm5, %vm1075_vm6  ;;  %vm1336_vm5 = vcmask 1040384   ;;  %vm1343_vm6 = vcmask 523264  }
 0xae9   :  { %v1084_v7 = vmul.f32 %v1500_v61, %v1082_v6  ;;  %vm1079_vm12 = vmor %vm1071_vm9, %vm1077_vm11 }
 0xaea   :  { %v1081_v18 = vsel %vm1079_vm12, 1.0, %v1620_v4 }
 0xaeb   :  { %v1083_v9 = vmul.f32 %v1081_v18, %v1029_v62  ;;  %v1088_v10 = vsel %vm246_vm7, %v1084_v7, 0.0 }
 0xaec   :  { %1089 = vadd.xlane.f32.xlu1 %v1088_v10 }
 0xaed   :  { %v1085_v11 = vsel %vm246_vm7, %v1083_v9, 0.0 }
 0xaee   :  { %1086 = vadd.xlane.f32.xlu0 %v1085_v11 }
 0xafd   :  { %1104 = vperm.xlu1 %1565, %v1591_v14  }
 0xb79   :  { %v1090_v42 = vpop.xlane.xlu1 %1089 }
 0xb7a   :  { %vm1092_vm13 = vcmp.lt.f32.partialorder %v1090_v42, %v1056_v17 }
 0xb7b   :  { %v1087_v41 = vpop.xlane.xlu0 %1086  ;;  %v1094_v24 = vsel %vm1092_vm13, 1.0, %v1620_v4 }
 0xb7c   :  { %vm1091_vm14 = vcmp.lt.f32.partialorder %v1087_v41, %v1053_v16  ;;  %v1110_v27 = vmul.f32 %v1094_v24, %v1837_v26 }
 0xb7d   :  { %v1093_v43 = vsel %vm1091_vm14, 1.0, %v1620_v4  ;;  %v1105_v19 = vpop.permute.xlu1 %1104 }
 0xb7e   :  { %v1109_v21 = vmul.f32 %v1093_v43, %v1830_v22  ;;  %v1108_v23 = vmul.f32 %v1105_v19, %v1809_v13  ;;  %vm1295_vm0 = vcmp.gt.f32.partialorder %v1110_v27, 0.0 }
 0xb7f   :  { %v1297_v31 = vsel %vm1295_vm0, 1, %v1621_v28 }
 0xb80   :  { %v1553_v25 = vpack.c.bf16 %v1108_v23, %v1107_v20  ;;  %1111 = vxpose.xlu1.b32.start [1/2] (short) (narrow) %v1109_v21, 8  ;;  %vm1294_vm15 = vcmp.gt.f32.partialorder %v1109_v21, 0.0 }
 0xb81   :  { %v1296_v29 = vsel %vm1294_vm15, 1, %v1621_v28 }
 0xb82   :  { %1554 = vmatpush3.bf16.msra.mxu0 %v1553_v25 }
 0xb83   :  { %1555 = vmatprep.subr.bf16.mxu0 %v1618_v3 }
 0xb84   :  { %1112 = vxpose.xlu1.b32.end [2/2] (short) (narrow) %v1110_v27, 8 }
 0xba2   :  { %1299 = vperm.xlu1 %1565, %v1296_v29  }
 0xc00   :  { %v1127_v30 = vpop.trf.xlu1 }
 0xc01   :  { %1506 = vmatmul.mubr.msk.f32.vlgmr.msra.gmra.mrb[10].mxu0 %vm246_vm7, %v1127_v30 }
 0xc02   :  { %1556 = vmatpush3.bf16.msra.mxu0 %v1622_v32  ;;  %1512 = vmatprep.mubr.msk.f32.mxu0 %vm1619_vm1, %v1620_v4 }
 0xc05   :  { %1513 = vmatmul.mubr.msk.f32.vlgmr.msra.gmra.mrb[12].mxu0 %vm246_vm7, %v1127_v30 }
 0xc21   :  { %v1300_v37 = vpop.permute.xlu1 %1299 }
 0xc22   :  { %vm1304_vm4 = vcmp.eq.s32.totalorder %v1300_v37, 1 }
 0xc23   :  { %v1306_v45 = vsel %vm1304_vm4, %v1107_v20, -1e+30 }
 0xc24   :  { %v1308_v49 = vsel %vm144_vm2, %v1306_v45, -inf }
 0xcd4   :  { %v1212_v12 = vpop.f32.mrb[10].mxu0 }
 0xcd5   :  { %v1507_v13 = vpop.f32.mrb[11].mxu0 }
 0xcd8   :  { %v1282_v22 = vpop.f32.mrb[12].mxu0 }
 0xcd9   :  { %v1286_v26 = vmax.f32 %v1282_v22, 1.0  ;;  %v1514_v3 = vpop.f32.mrb[13].mxu0 }
 0xcdb   :  { %1289 = vperm.xlu0 %1566, %v1286_v26  }
 0xcdf   :  { %1302 = vperm.xlu0 %1566, %v1297_v31  }
 0xce3   :  { %1567 = vset.pattern.permute.xlu0 %v1623_v15 }
 0xce4   :  { %1318 = vperm.xlu0 %1567, %v1296_v29  }
 0xce8   :  { %1321 = vperm.xlu0 %1567, %v1297_v31  }
 0xd5a   :  { %v1290_v32 = vpop.permute.xlu0 %1289 }
 0xd5b   :  { %1592 = vrcp.f32 %v1290_v32 }
 0xd5e   :  { %v1303_v34 = vpop.permute.xlu0 %1302 }
 0xd5f   :  { %vm1305_vm7 = vcmp.eq.s32.totalorder %v1303_v34, 1 }
 0xd60   :  { %v1307_v28 = vsel %vm1305_vm7, %v1108_v23, -1e+30 }
 0xd61   :  { %v1309_v46 = vsel %vm144_vm2, %v1307_v28, -inf }
 0xd62   :  { %v1310_v50 = vmax.f32 %v1308_v49, %v1309_v46 }
 0xd63   :  { %v1319_v35 = vpop.permute.xlu0 %1318 }
 0xd64   :  { %vm1323_vm3 = vcmp.eq.s32.totalorder %v1319_v35, 1  ;;  %v1311_v52 = vrot.slane %v1310_v50, 4 }
 0xd65   :  { %v1593_v33 = vpop.eup %1592  ;;  %v1325_v39 = vsel %vm1323_vm3, %v1107_v20, -1e+30 }
 0xd66   :  { %v1293_v4 = vmul.f32 %v1593_v33, %v1212_v12  ;;  %v1327_v47 = vsel %vm144_vm2, %v1325_v39, -inf  ;;  %v1312_v54 = vmax.f32 %v1310_v50, %v1311_v52 }
 0xd67   :  { %v1322_v36 = vpop.permute.xlu0 %1321 }
 0xd68   :  { %1339 = vrot.lane.b32.xlu0 %v1293_v4, %s1624_s0  ;;  %vm1324_vm1 = vcmp.eq.s32.totalorder %v1322_v36, 1  ;;  %v1313_v56 = vrot.slane %v1312_v54, 2 }
 0xd69   :  { %v1326_v38 = vsel %vm1324_vm1, %v1108_v23, -1e+30 }
 0xd6a   :  { %v1328_v44 = vsel %vm144_vm2, %v1326_v38, -inf  ;;  %v1314_v57 = vmax.f32 %v1312_v54, %v1313_v56 }
 0xd6b   :  { %v1329_v48 = vmax.f32 %v1327_v47, %v1328_v44 }
 0xd6c   :  { %v1315_v59 = vrot.slane %v1314_v57, 1 }
 0xd6d   :  { %v1330_v51 = vrot.slane %v1329_v48, 4 }
 0xd6e   :  { %v1316_v61 = vmax.f32 %v1314_v57, %v1315_v59 }
 0xd6f   :  { %v1331_v53 = vmax.f32 %v1329_v48, %v1330_v51 }
 0xd71   :  { %v1332_v55 = vrot.slane %v1331_v53, 2 }
 0xd73   :  { %v1333_v8 = vmax.f32 %v1331_v53, %v1332_v55 }
 0xd75   :  { %v1334_v58 = vrot.slane %v1333_v8, 1 }
 0xd77   :  { %v1335_v60 = vmax.f32 %v1333_v8, %v1334_v58 }
 0xd79   :  { %v1337_v63 = vsel %vm1336_vm5, %v1316_v61, %v1335_v60 }
 0xdda   :  { %v1340_v62 = vpop.permute.xlu0 %1339 }
 0xddb   :  { %v1342_v0 = vsel %vm144_vm2, %v1337_v63, %v1340_v62 }
 0xddc   :  { %v1344_v1 = vsel %vm1343_vm6, %v1342_v0, 0.0 }
 0xddd   :  { %1345 = vst [vmem:[#allocation2] sm:$0x3] %v1344_v1 }
 0xdde   :  { %1605 = shalt.err (!%p1602_p4)
}
 0xddf   :  { %s1606_s19 = scalar_lea.hbm %s1913_s5, 32 }
 0xde0   :  { %p1607_p5 = scmp.ne.s32.totalorder %s1913_s5, %s1606_s19  ;;  %p1610_p6 = scmp.lt.u32.totalorder %s1606_s19, %s1913_s5 }
 0xde2   :  { %p1612_p7 = pnand %p1610_p6, %p1607_p5 }
 0xde4   :  { %1615 = shalt.err (!%p1612_p7)
}
 0xde5   :  { %1355 = dma.vmem_to_hbm [thread:$0]  %s1353_s15, 32, %s1913_s5, [#allocation3]  }
 0xde6   :  { %1616 = dma.done.wait [#allocation3], 32  }
 0xde7   :  { %1617 = vsyncadd [#allocation3], 4294967264 }
 0xde8   :  { %1359 = vsyncpa [#allocation3], 1 }

</bundles_post_ra>
